<compile_context>
chip_gen: v7x
topology: tpu7x:2x2x1
jax: 0.10.0
libtpu: 0.0.40
codegen_flags: <defaults>
</compile_context>

<pallas_src>
import jax
import jax.numpy as jnp
from jax.experimental import pallas as pl
from jax.experimental.pallas import tpu as pltpu


# ----------------------------------------------------------------------------
# Pallas kernel: batched (all-tasks) SVGP predictive mean
# ----------------------------------------------------------------------------
def gp_mean_kernel(x_ref, zt_ref, hi_ref, hz_ref, w_ref, c_ref, out_ref):
    # x_ref:  (tile_n, D)    test-input row tile
    # zt_ref: (D, TMp)       stacked inducing points, pre-scaled by 1/ls_t^2
    # hi_ref: (1, TMp)       0.5 / ls_t^2 per column
    # hz_ref: (1, TMp)       0.5 * |z|^2 / ls_t^2 per column
    # w_ref:  (TMp, Tp)      block-diagonal  W[t*M+m, t] = os_t * alpha_t[m]
    # c_ref:  (1, Tp)        constant mean per (padded) task
    # out_ref:(tile_n, Tp)   predictive mean (lane-dense, padded tasks = 0)
    x = x_ref[...]                                          # (tile_n, D)
    x2 = jnp.sum(x * x, axis=-1, keepdims=True)             # XLU reduce, (tile_n,1)
    cross = jnp.dot(x, zt_ref[...],                         # MXU, (tile_n, TMp)
                    preferred_element_type=jnp.float32)
    # exp(-0.5 * sqdist) with sqdist clamped >= 0  <=>  clamp exponent <= 0.
    exp_arg = jnp.minimum(cross - x2 * hi_ref[...] - hz_ref[...], 0.0)
    k = jnp.exp(exp_arg)                                    # EUP, (tile_n, TMp)
    out_ref[...] = (jnp.dot(k, w_ref[...],                  # MXU, (tile_n, Tp)
                            preferred_element_type=jnp.float32)
                    + c_ref[...])


def _svgp_mean_pallas(x_pad, p, tile_n):
    Np, D = x_pad.shape
    TMp = p["zt"].shape[1]
    Tp = p["w"].shape[1]
    grid_n = Np // tile_n

    flops = 2.0 * Np * D * TMp + 2.0 * Np * TMp * Tp + 4.0 * Np * TMp
    bytes_accessed = 4 * (Np * D + D * TMp + 2 * TMp + TMp * Tp + Tp + Np * Tp)
    cost = pl.CostEstimate(flops=int(flops),
                           transcendentals=int(Np * TMp),
                           bytes_accessed=int(bytes_accessed))

    return pl.pallas_call(
        gp_mean_kernel,
        out_shape=jax.ShapeDtypeStruct((Np, Tp), jnp.float32),
        grid=(grid_n,),
        in_specs=[
            pl.BlockSpec((tile_n, D), lambda i: (i, 0)),    # X row tile (streams)
            pl.BlockSpec((D, TMp), lambda i: (0, 0)),       # Zs^T (all tasks, resident)
            pl.BlockSpec((1, TMp), lambda i: (0, 0)),       # 0.5/ls^2
            pl.BlockSpec((1, TMp), lambda i: (0, 0)),       # 0.5*|z|^2/ls^2
            pl.BlockSpec((TMp, Tp), lambda i: (0, 0)),      # block-diag weights
            pl.BlockSpec((1, Tp), lambda i: (0, 0)),        # constant means
        ],
        out_specs=pl.BlockSpec((tile_n, Tp), lambda i: (i, 0)),
        compiler_params=pltpu.CompilerParams(
            dimension_semantics=("parallel",)),
        cost_estimate=cost,
    )(x_pad, p["zt"], p["half_inv_ls2"], p["half_z2"], p["w"], p["c_row"])


# ----------------------------------------------------------------------------
# Parameter construction (deterministic, synthetic) and one-time precompute
# ----------------------------------------------------------------------------
def make_gp_params(key, obs_dim, action_size, num_inducing_pts):
    input_size = obs_dim + action_size
    num_tasks = obs_dim
    M = num_inducing_pts
    kz, km, kl, ks, kc = jax.random.split(key, 5)

    z = jax.random.normal(kz, (num_tasks, M, input_size), jnp.float32)
    var_mean = 0.1 * jax.random.normal(km, (num_tasks, M), jnp.float32)
    lengthscale = 0.75 + 0.5 * jax.random.uniform(kl, (num_tasks,),
                                                  dtype=jnp.float32)
    outputscale = 0.5 + jax.random.uniform(ks, (num_tasks,),
                                           dtype=jnp.float32)
    const_mean = 0.1 * jax.random.normal(kc, (num_tasks,), jnp.float32)

    # Whitened SVGP: alpha_t = L_t^{-T} m_t, L_t = chol(K_ZZ,t + jitter I).
    jitter = 1e-4

    def per_task_alpha(z_t, m_t, ls_t, os_t):
        zs = z_t / ls_t
        sq = (jnp.sum(zs * zs, -1, keepdims=True)
              + jnp.sum(zs * zs, -1)[None, :] - 2.0 * zs @ zs.T)
        k_zz = os_t * jnp.exp(-0.5 * jnp.maximum(sq, 0.0))
        k_zz = k_zz + jitter * jnp.eye(M, dtype=jnp.float32)
        L = jnp.linalg.cholesky(k_zz)
        return jax.scipy.linalg.solve_triangular(L.T, m_t, lower=False)

    alpha = jax.vmap(per_task_alpha)(z, var_mean, lengthscale, outputscale)

    return {"z": z, "alpha": alpha, "ls": lengthscale, "os": outputscale,
            "c": const_mean}


def precompute_inference_params(raw):
    """Fold all parameter-only math out of the hot kernel (done once)."""
    z, alpha, ls, os_, c = raw["z"], raw["alpha"], raw["ls"], raw["os"], raw["c"]
    num_tasks, M, D = z.shape
    TM = num_tasks * M
    inv_ls2 = 1.0 / (ls * ls)                                    # (T,)

    zt = (z * inv_ls2[:, None, None]).reshape(TM, D).T           # (D, TM)
    half_inv_ls2 = jnp.repeat(0.5 * inv_ls2, M)[None, :]         # (1, TM)
    half_z2 = (0.5 * jnp.sum(z * z, -1) * inv_ls2[:, None]).reshape(1, TM)

    # Block-diagonal weight matrix folding outputscale into alpha, padded to a
    # lane-dense (multiple-of-128) number of output columns.
    Tp = max(128, ((num_tasks + 127) // 128) * 128)
    w_blocks = os_[:, None] * alpha                              # (T, M)
    eye_pad = jnp.eye(num_tasks, Tp, dtype=jnp.float32)          # (T, Tp)
    w = (w_blocks[:, :, None] * eye_pad[:, None, :]).reshape(TM, Tp)
    c_row = jnp.zeros((1, Tp), jnp.float32).at[0, :num_tasks].set(c)

    # Pad the stacked inducing dimension to a multiple of 128 lanes.  Padded
    # columns have zt = hi = hz = 0 -> k = exp(0) = 1, but their W rows are 0,
    # so they contribute nothing to the output.
    TMp = ((TM + 127) // 128) * 128
    if TMp != TM:
        pad = TMp - TM
        zt = jnp.pad(zt, ((0, 0), (0, pad)))
        half_inv_ls2 = jnp.pad(half_inv_ls2, ((0, 0), (0, pad)))
        half_z2 = jnp.pad(half_z2, ((0, 0), (0, pad)))
        w = jnp.pad(w, ((0, pad), (0, 0)))

    return {"zt": zt, "half_inv_ls2": half_inv_ls2, "half_z2": half_z2,
            "w": w, "c_row": c_row}


def _pick_tile_n(N, D, TMp, Tp):
    """Row tile: biggest tile that fits comfortably in VMEM (docs: >=512 rows
    reaches ~85% of HBM roofline, 1024 ~86%), single sublane-aligned block for
    small N."""
    if N < 512:
        return ((N + 7) // 8) * 8
    # Per-row VMEM footprint (f32): X row + K intermediate + output row,
    # x2 for double-buffered streams (X, out).
    bytes_per_row = 4 * (2 * D + TMp + 2 * Tp)
    budget = 24 * 1024 * 1024                      # leave headroom vs 32 MiB scoped
    cap = max(512, (budget // bytes_per_row) // 256 * 256)
    return min(1024, cap)


# ----------------------------------------------------------------------------
# Forward (mirrors GPDynamicsModel.forward, train=False branch)
# ----------------------------------------------------------------------------
@jax.jit
def gp_dynamics_forward(infer_params, observation, prev_action, prev_reward,
                        action):
    # prev_action / prev_reward are accepted but unused, as in the reference.
    del prev_action, prev_reward
    T, B = observation.shape[0], observation.shape[1]
    obs_flat = observation.reshape(T * B, -1)
    act_flat = action.reshape(T * B, -1)
    num_tasks = obs_flat.shape[1]
    gp_input = jnp.concatenate([obs_flat, act_flat], axis=1).astype(jnp.float32)

    N, D = gp_input.shape
    TMp = infer_params["zt"].shape[1]
    Tp = infer_params["w"].shape[1]
    tile_n = _pick_tile_n(N, D, TMp, Tp)
    Np = ((N + tile_n - 1) // tile_n) * tile_n
    x_pad = jnp.pad(gp_input, ((0, Np - N), (0, 0)))

    out = _svgp_mean_pallas(x_pad, infer_params, tile_n)     # (Np, Tp)
    # MultitaskGaussianLikelihood does not change the mean; squeeze(-1) is a
    # no-op for num_tasks > 1.  restore_leading_dims -> (T, B, num_tasks).
    return out[:N, :num_tasks].reshape(T, B, num_tasks)


# Pure-JAX reference of the same math (natural gpytorch form), for checking.
def reference_forward(raw, observation, action):
    T, B = observation.shape[0], observation.shape[1]
    x = jnp.concatenate([observation.reshape(T * B, -1),
                         action.reshape(T * B, -1)], axis=1).astype(jnp.float32)

    def per_task(z_t, a_t, ls_t, os_t, c_t):
        xs = x / ls_t
        zs = z_t / ls_t
        sq = (jnp.sum(xs * xs, -1, keepdims=True)
              + jnp.sum(zs * zs, -1)[None, :] - 2.0 * xs @ zs.T)
        k = os_t * jnp.exp(-0.5 * jnp.maximum(sq, 0.0))
        return k @ a_t + c_t

    means = jax.vmap(per_task)(raw["z"], raw["alpha"], raw["ls"], raw["os"],
                               raw["c"])                     # (num_tasks, N)
    return means.T.reshape(T, B, -1)


if __name__ == "__main__":
    # Small shapes: observation_shape=(12,), action_size=4, M=32, T=4, B=2.
    obs_dim, action_size, num_inducing = 12, 4, 32
    T, B = 4, 2

    key = jax.random.PRNGKey(0)
    kp, ko, ka, kr = jax.random.split(key, 4)
    raw_params = make_gp_params(kp, obs_dim, action_size, num_inducing)
    infer_params = precompute_inference_params(raw_params)

    observation = jax.random.normal(ko, (T, B, obs_dim), jnp.float32)
    action = jax.random.normal(ka, (T, B, action_size), jnp.float32)
    prev_action = jnp.zeros((T, B, action_size), jnp.float32)
    prev_reward = jax.random.normal(kr, (T, B), jnp.float32)

    out = gp_dynamics_forward(infer_params, observation, prev_action,
                              prev_reward, action)
    out = jax.block_until_ready(out)

    ref = reference_forward(raw_params, observation, action)
    assert out.shape == (T, B, obs_dim), out.shape
    # Kernel uses an algebraically refactored (pre-scaled / folded) form of the
    # same math, so allow a slightly looser tolerance than exact-bitwise.
    assert jnp.allclose(out, ref, rtol=1e-4, atol=1e-4), (
        float(jnp.max(jnp.abs(out - ref))))

    print("KERNEL_OK")
</pallas_src>

<mosaic_0001>
module attributes {stable_mosaic.version = 11 : i64} {
  func.func @gp_mean_kernel(%arg0: i32, %arg1: memref<8x16xf32, #tpu.memory_space<vmem>>, %arg2: memref<16x384xf32, #tpu.memory_space<vmem>>, %arg3: memref<1x384xf32, #tpu.memory_space<vmem>>, %arg4: memref<1x384xf32, #tpu.memory_space<vmem>>, %arg5: memref<384x128xf32, #tpu.memory_space<vmem>>, %arg6: memref<1x128xf32, #tpu.memory_space<vmem>>, %arg7: memref<8x128xf32, #tpu.memory_space<vmem>>) attributes {dimension_semantics = [#tpu.dimension_semantics<parallel>], iteration_bounds = array<i64: 1>, scalar_prefetch = 0 : i64, scratch_operands = 0 : i64, tpu.core_type = #tpu.core_type<tc>, window_params = [{transform_indices = @transform_0, window_bounds = array<i64: 8, 16>}, {pipeline_mode = #tpu.pipeline_mode<synchronous>, transform_indices = @transform_1, window_bounds = array<i64: 16, 384>}, {pipeline_mode = #tpu.pipeline_mode<synchronous>, transform_indices = @transform_2, window_bounds = array<i64: 1, 384>}, {pipeline_mode = #tpu.pipeline_mode<synchronous>, transform_indices = @transform_3, window_bounds = array<i64: 1, 384>}, {pipeline_mode = #tpu.pipeline_mode<synchronous>, transform_indices = @transform_4, window_bounds = array<i64: 384, 128>}, {pipeline_mode = #tpu.pipeline_mode<synchronous>, transform_indices = @transform_5, window_bounds = array<i64: 1, 128>}, {transform_indices = @transform_6, window_bounds = array<i64: 8, 128>}]} {
    %c0 = arith.constant 0 : index
    %c0_0 = arith.constant 0 : index
    %0 = vector.load %arg1[%c0, %c0_0] : memref<8x16xf32, #tpu.memory_space<vmem>>, vector<8x16xf32>
    %1 = arith.mulf %0, %0 : vector<8x16xf32>
    %cst = arith.constant dense<0.000000e+00> : vector<8xf32>
    %2 = vector.multi_reduction <add>, %1, %cst [1] : vector<8x16xf32> to vector<8xf32>
    %3 = vector.shape_cast %2 : vector<8xf32> to vector<8x1xf32>
    %c0_1 = arith.constant 0 : index
    %c0_2 = arith.constant 0 : index
    %4 = vector.load %arg2[%c0_1, %c0_2] : memref<16x384xf32, #tpu.memory_space<vmem>>, vector<16x384xf32>
    %cst_3 = arith.constant dense<0.000000e+00> : vector<8x384xf32>
    %5 = tpu.matmul %0, %4, %cst_3 {dimension_numbers = #tpu.dot_dimension_numbers<[1], [0], [0], [1], [0, 0, 1, 1], [], []>} : vector<8x16xf32>, vector<16x384xf32>, vector<8x384xf32> -> vector<8x384xf32>
    %c0_4 = arith.constant 0 : index
    %c0_5 = arith.constant 0 : index
    %6 = vector.load %arg3[%c0_4, %c0_5] : memref<1x384xf32, #tpu.memory_space<vmem>>, vector<1x384xf32>
    %7 = vector.broadcast %3 : vector<8x1xf32> to vector<8x384xf32>
    %8 = vector.broadcast %6 : vector<1x384xf32> to vector<8x384xf32>
    %9 = arith.mulf %7, %8 : vector<8x384xf32>
    %10 = arith.subf %5, %9 : vector<8x384xf32>
    %c0_6 = arith.constant 0 : index
    %c0_7 = arith.constant 0 : index
    %11 = vector.load %arg4[%c0_6, %c0_7] : memref<1x384xf32, #tpu.memory_space<vmem>>, vector<1x384xf32>
    %12 = vector.broadcast %11 : vector<1x384xf32> to vector<8x384xf32>
    %13 = arith.subf %10, %12 : vector<8x384xf32>
    %cst_8 = arith.constant 0.000000e+00 : f32
    %14 = vector.broadcast %cst_8 : f32 to vector<8x384xf32>
    %15 = arith.minimumf %13, %14 : vector<8x384xf32>
    %16 = math.exp %15 : vector<8x384xf32>
    %c0_9 = arith.constant 0 : index
    %c0_10 = arith.constant 0 : index
    %17 = vector.load %arg5[%c0_9, %c0_10] : memref<384x128xf32, #tpu.memory_space<vmem>>, vector<384x128xf32>
    %cst_11 = arith.constant dense<0.000000e+00> : vector<8x128xf32>
    %18 = tpu.matmul %16, %17, %cst_11 {dimension_numbers = #tpu.dot_dimension_numbers<[1], [0], [0], [1], [0, 0, 1, 1], [], []>} : vector<8x384xf32>, vector<384x128xf32>, vector<8x128xf32> -> vector<8x128xf32>
    %c0_12 = arith.constant 0 : index
    %c0_13 = arith.constant 0 : index
    %19 = vector.load %arg6[%c0_12, %c0_13] : memref<1x128xf32, #tpu.memory_space<vmem>>, vector<1x128xf32>
    %20 = vector.broadcast %19 : vector<1x128xf32> to vector<8x128xf32>
    %21 = arith.addf %18, %20 : vector<8x128xf32>
    %c0_14 = arith.constant 0 : index
    %c0_15 = arith.constant 0 : index
    %22 = vector.load %arg7[%c0_14, %c0_15] : memref<8x128xf32, #tpu.memory_space<vmem>>, vector<8x128xf32>
    tpu.vector_store %arg7[%c0_14, %c0_15], %21 {strides = array<i32>} : memref<8x128xf32, #tpu.memory_space<vmem>>, vector<8x128xf32>,
    return
  }
  func.func @transform_0(%arg0: i32) -> (i32, i32) {
    %c0_i32 = arith.constant 0 : i32
    %c0_i32_0 = arith.constant 0 : i32
    return %arg0, %c0_i32 : i32, i32
  }
  func.func @transform_1(%arg0: i32) -> (i32, i32) {
    %c0_i32 = arith.constant 0 : i32
    %c0_i32_0 = arith.constant 0 : i32
    %c0_i32_1 = arith.constant 0 : i32
    return %c0_i32, %c0_i32_0 : i32, i32
  }
  func.func @transform_2(%arg0: i32) -> (i32, i32) {
    %c0_i32 = arith.constant 0 : i32
    %c0_i32_0 = arith.constant 0 : i32
    %c0_i32_1 = arith.constant 0 : i32
    return %c0_i32, %c0_i32_0 : i32, i32
  }
  func.func @transform_3(%arg0: i32) -> (i32, i32) {
    %c0_i32 = arith.constant 0 : i32
    %c0_i32_0 = arith.constant 0 : i32
    %c0_i32_1 = arith.constant 0 : i32
    return %c0_i32, %c0_i32_0 : i32, i32
  }
  func.func @transform_4(%arg0: i32) -> (i32, i32) {
    %c0_i32 = arith.constant 0 : i32
    %c0_i32_0 = arith.constant 0 : i32
    %c0_i32_1 = arith.constant 0 : i32
    return %c0_i32, %c0_i32_0 : i32, i32
  }
  func.func @transform_5(%arg0: i32) -> (i32, i32) {
    %c0_i32 = arith.constant 0 : i32
    %c0_i32_0 = arith.constant 0 : i32
    %c0_i32_1 = arith.constant 0 : i32
    return %c0_i32, %c0_i32_0 : i32, i32
  }
  func.func @transform_6(%arg0: i32) -> (i32, i32) {
    %c0_i32 = arith.constant 0 : i32
    %c0_i32_0 = arith.constant 0 : i32
    return %arg0, %c0_i32 : i32, i32
  }
}

</mosaic_0001>

<bundles_post_ra>
// kernel: gp_dynamics_forward.1
= control target key start
LH: loop header
LB: loop body
LE: loop exit
PB: predicated region body
PF: predicated region fallthrough
CT: control target
= control target key end

     0   :  { %11 = vsyncpa [#allocation3], 0  ;;  %s830_s0 = inlined_call_operand.vmem [shape: f32[8,16], index: 0, kind: input, shape index: {}]   ;;  %s831_s1 = inlined_call_operand.hbm [shape: f32[16,384], index: 1, kind: input, shape index: {}]   ;;  %s832_s2 = inlined_call_operand.vmem [shape: f32[1,384], index: 2, kind: input, shape index: {}]   ;;  %s833_s3 = inlined_call_operand.vmem [shape: f32[1,384], index: 3, kind: input, shape index: {}]   ;;  %s834_s4 = inlined_call_operand.hbm [shape: f32[384,128], index: 4, kind: input, shape index: {}]   ;;  %s835_s5 = inlined_call_operand.vmem [shape: f32[1,128], index: 5, kind: input, shape index: {}]   ;;  %s836_s6 = inlined_call_operand.hbm [shape: f32[8,128], index: 6, kind: output, shape index: {}]  }
   0x1   :  { %12 = vsyncpa [#allocation6], 0 }
   0x2   :  { %13 = vsyncpa [#allocation4], 0  ;;  %s723_s21 = smov [#allocation2]   ;;  %s651_s25 = scalar_lea.hbm %s831_s1, 768 }
   0x3   :  { %s21_s22 = sshll.u32 %s723_s21, 4  ;;  %p652_p0 = scmp.ne.s32.totalorder %s831_s1, %s651_s25  ;;  %s22_s22 = int_to_ptr.vmem [resolvable:$true] %s21_s22 }
   0x4   :  { %p655_p1 = scmp.lt.u32.totalorder %s651_s25, %s831_s1 }
   0x6   :  { %p657_p2 = pnand %p655_p1, %p652_p0 }
   0x8   :  { %660 = shalt.err (!%p657_p2)
}
   0x9   :  { %s661_s30 = scalar_lea.vmem %s22_s22, 768  ;;  %p666_p4 = scmp.lt.s32.totalorder %s22_s22, %s22_s22 }
   0xa   :  { %p662_p3 = scmp.ne.s32.totalorder %s22_s22, %s661_s30  ;;  %p667_p5 = scmp.lt.s32.totalorder %s661_s30, %s661_s30 }
   0xc   :  { %p668_p6 = por %p667_p5, %p666_p4 }
   0xe   :  { %p669_p7 = pnand %p668_p6, %p662_p3 }
  0x10   :  { %672 = shalt.err (!%p669_p7)
}
  0x11   :  { %s724_s7 = smov 384   ;;  %s725_s8 = smov 24  }
  0x12   :  { %27 = dma.hbm_to_vmem [thread:$0]  %s831_s1, 768, %s22_s22, [#allocation3], %s724_s7, %s724_s7, %s725_s8  }
  0x13   :  { %s726_s11 = smov [#allocation5]   ;;  %s673_s15 = scalar_lea.hbm %s834_s4, 6144 }
  0x14   :  { %s37_s12 = sshll.u32 %s726_s11, 4  ;;  %p674_p8 = scmp.ne.s32.totalorder %s834_s4, %s673_s15  ;;  %s38_s12 = int_to_ptr.vmem [resolvable:$true] %s37_s12 }
  0x15   :  { %p677_p9 = scmp.lt.u32.totalorder %s673_s15, %s834_s4 }
  0x17   :  { %p679_p10 = pnand %p677_p9, %p674_p8 }
  0x19   :  { %682 = shalt.err (!%p679_p10)
}
  0x1a   :  { %s683_s20 = scalar_lea.vmem %s38_s12, 6144  ;;  %p688_p12 = scmp.lt.s32.totalorder %s38_s12, %s38_s12 }
  0x1b   :  { %p684_p11 = scmp.ne.s32.totalorder %s38_s12, %s683_s20  ;;  %p689_p13 = scmp.lt.s32.totalorder %s683_s20, %s683_s20 }
  0x1d   :  { %p690_p0 = por %p689_p13, %p688_p12 }
  0x1f   :  { %p691_p1 = pnand %p690_p0, %p684_p11 }
  0x21   :  { %694 = shalt.err (!%p691_p1)
}
  0x22   :  { %s727_s1 = smov 128   ;;  %s728_s21 = smov 8  }
  0x23   :  { %43 = dma.hbm_to_vmem [thread:$0]  %s834_s4, 6144, %s38_s12, [#allocation6], %s727_s1, %s727_s1, %s728_s21  }
  0x24   :  { %717 = dma.done.wait [#allocation3], 768  }
  0x25   :  { %718 = vsyncadd [#allocation3], 4294966528 }
  0x26   :  { %719 = dma.done.wait [#allocation6], 6144  }
  0x27   :  { %720 = vsyncadd [#allocation6], 4294961152  ;;  %v729_v0 = vmov 0.0|0.0   ;;  %v730_v1 = vmov 0.0   ;;  %vm731_vm0 = vmmov 0   ;;  %v59_v2 = vld [vmem:[#allocation2 + $0x8] sm:$0xff] }
  0x28   :  { %576 = vmatprep.subr.bf16.mxu1 %v729_v0  ;;  %131 = vmatprep.mubr.f32.mxu0 %v730_v1  ;;  %v62_v3 = vld [vmem:[#allocation2 + $0x20] sm:$0xff]  ;;  %v61_v6 = vld [vmem:[#allocation2 + $0x18] sm:$0xff]  ;;  %v60_v7 = vld [vmem:[#allocation2 + $0x10] sm:$0xff]  ;;  %vm54_vm1 = vcmask 130048   ;;  %s732_s28 = smov [#allocation7]  }
  0x29   :  { %534 = vmatprep.mubr.msk.f32.mxu1 %vm731_vm0, %v730_v1  ;;  %v58_v4 = vld [vmem:[#allocation2] sm:$0xff]  ;;  %v572_v5 = vpack.c.bf16 %v62_v3, %v59_v2  ;;  %v63_v8 = vld [vmem:[#allocation2 + $0x28] sm:$0xff]  ;;  %v292_v12 = vld [vmem:[#allocation5 + $0x100] sm:$0xff]  ;;  %s462_s29 = sshll.u32 %s732_s28, 4  ;;  %s463_s29 = int_to_ptr.vmem [resolvable:$true] %s462_s29 }
  0x2a   :  { %v574_v9 = vpack.c.bf16 %v61_v6, %v58_v4  ;;  %v577_v10 = vpack.c.bf16 %v63_v8, %v60_v7  ;;  %v52_v11 = vld [vmem:[%s830_s0] sm:$0xff]  ;;  %v293_v13 = vld [vmem:[#allocation5 + $0x108] sm:$0xff]  ;;  %v276_v15 = vld [vmem:[#allocation5 + $0x80] sm:$0xff]  ;;  %s695_s30 = scalar_lea.vmem %s463_s29, 128  ;;  %p700_p3 = scmp.lt.s32.totalorder %s463_s29, %s463_s29 }
  0x2b   :  { %573 = vmatprep.subr.bf16.mxu0 %v572_v5  ;;  %v53_v14 = vmul.f32 %v52_v11, %v52_v11  ;;  %v277_v16 = vld [vmem:[#allocation5 + $0x88] sm:$0xff]  ;;  %v260_v17 = vld [vmem:[#allocation5] sm:$0xff]  ;;  %v612_v18 = vpack.c.bf16 %v293_v13, %v292_v12  ;;  %v294_v21 = vld [vmem:[#allocation5 + $0x110] sm:$0xff]  ;;  %p696_p2 = scmp.ne.s32.totalorder %s463_s29, %s695_s30  ;;  %p701_p4 = scmp.lt.s32.totalorder %s695_s30, %s695_s30 }
  0x2c   :  { %575 = vmatpush1.bf16.msra.mxu0 %v574_v9  ;;  %578 = vmatpush3.bf16.msra.mxu1 %v577_v10  ;;  %v579_v19 = vpack.c.bf16 %v277_v16, %v276_v15  ;;  %v261_v20 = vld [vmem:[#allocation5 + $0x8] sm:$0xff]  ;;  %v295_v22 = vld [vmem:[#allocation5 + $0x118] sm:$0xff]  ;;  %v278_v25 = vld [vmem:[#allocation5 + $0x90] sm:$0xff] }
  0x2d   :  { %v55_v23 = vsel %vm54_vm1, %v53_v14, 0.0  ;;  %611 = vmatprep.subr.bf16.mxu1 %v729_v0  ;;  %v581_v24 = vpack.c.bf16 %v261_v20, %v260_v17  ;;  %v279_v26 = vld [vmem:[#allocation5 + $0x98] sm:$0xff]  ;;  %v262_v27 = vld [vmem:[#allocation5 + $0x10] sm:$0xff]  ;;  %v615_v30 = vpack.c.bf16 %v295_v22, %v294_v21  ;;  %v296_v32 = vld [vmem:[#allocation5 + $0x120] sm:$0xff]  ;;  %p702_p5 = por %p701_p4, %p700_p3 }
  0x2e   :  { %56 = vadd.xlane.f32.xlu0 %v55_v23  ;;  %580 = vmatprep.subr.bf16.mxu0 %v579_v19  ;;  %v583_v28 = vpack.c.bf16 %v279_v26, %v278_v25  ;;  %v263_v29 = vld [vmem:[#allocation5 + $0x18] sm:$0xff]  ;;  %v297_v33 = vld [vmem:[#allocation5 + $0x128] sm:$0xff]  ;;  %v280_v35 = vld [vmem:[#allocation5 + $0xa0] sm:$0xff]  ;;  %v210_v23 = vlaneseq }
  0x2f   :  { %472 = vmatmul.mubr.msk.f32.vlgmr.msra.gmra.mrb[0].mxu0 %vm54_vm1, %v52_v11  ;;  %535 = vmatmul.mubr.msk.f32.vlgmr.msra.gmra.mrb[0].mxu1 %vm54_vm1, %v52_v11  ;;  %v585_v31 = vpack.c.bf16 %v263_v29, %v262_v27  ;;  %v618_v34 = vpack.c.bf16 %v297_v33, %v296_v32  ;;  %v281_v36 = vld [vmem:[#allocation5 + $0xa8] sm:$0xff]  ;;  %v264_v37 = vld [vmem:[#allocation5 + $0x20] sm:$0xff]  ;;  %v298_v41 = vld [vmem:[#allocation5 + $0x130] sm:$0xff]  ;;  %p703_p6 = pnand %p702_p5, %p696_p2 }
  0x30   :  { %613 = vmatpush3.bf16.msra.mxu1 %v612_v18  ;;  %582 = vmatpush3.bf16.msra.mxu0 %v581_v24  ;;  %v587_v38 = vpack.c.bf16 %v281_v36, %v280_v35  ;;  %v265_v39 = vld [vmem:[#allocation5 + $0x28] sm:$0xff]  ;;  %v299_v42 = vld [vmem:[#allocation5 + $0x138] sm:$0xff]  ;;  %v282_v44 = vld [vmem:[#allocation5 + $0xb0] sm:$0xff]  ;;  %v211_v24 = vshrl.u32 %v210_v23, 7 }
  0x31   :  { %614 = vmatprep.subr.bf16.mxu1 %v729_v0  ;;  %584 = vmatprep.subr.bf16.mxu0 %v583_v28  ;;  %v589_v40 = vpack.c.bf16 %v265_v39, %v264_v37  ;;  %v621_v43 = vpack.c.bf16 %v299_v42, %v298_v41  ;;  %v283_v45 = vld [vmem:[#allocation5 + $0xb8] sm:$0xff]  ;;  %v266_v47 = vld [vmem:[#allocation5 + $0x30] sm:$0xff]  ;;  %v300_v50 = vld [vmem:[#allocation5 + $0x140] sm:$0xff] }
  0x32   :  { %569 = vmatprep.mubr.msk.f32.mxu1 %vm731_vm0, %v730_v1  ;;  %v591_v46 = vpack.c.bf16 %v283_v45, %v282_v44  ;;  %v267_v48 = vld [vmem:[#allocation5 + $0x38] sm:$0xff]  ;;  %v301_v51 = vld [vmem:[#allocation5 + $0x148] sm:$0xff]  ;;  %v284_v53 = vld [vmem:[#allocation5 + $0xc0] sm:$0xff]  ;;  %v212_v25 = vsub.s32 0, %v211_v24  ;;  %v220_v26 = vsub.s32 2, %v211_v24  ;;  %v216_v28 = vsub.s32 1, %v211_v24 }
  0x33   :  { %v593_v49 = vpack.c.bf16 %v267_v48, %v266_v47  ;;  %v624_v52 = vpack.c.bf16 %v301_v51, %v300_v50  ;;  %v285_v54 = vld [vmem:[#allocation5 + $0xc8] sm:$0xff]  ;;  %v268_v56 = vld [vmem:[#allocation5 + $0x40] sm:$0xff]  ;;  %v302_v59 = vld [vmem:[#allocation5 + $0x150] sm:$0xff] }
  0x34   :  { %616 = vmatpush3.bf16.msra.mxu1 %v615_v30  ;;  %586 = vmatpush3.bf16.msra.mxu0 %v585_v31  ;;  %v595_v55 = vpack.c.bf16 %v285_v54, %v284_v53  ;;  %v269_v57 = vld [vmem:[#allocation5 + $0x48] sm:$0xff]  ;;  %v303_v60 = vld [vmem:[#allocation5 + $0x158] sm:$0xff]  ;;  %v286_v62 = vld [vmem:[#allocation5 + $0xd0] sm:$0xff] }
  0x35   :  { %617 = vmatprep.subr.bf16.mxu1 %v729_v0  ;;  %588 = vmatprep.subr.bf16.mxu0 %v587_v38  ;;  %v597_v58 = vpack.c.bf16 %v269_v57, %v268_v56  ;;  %v627_v61 = vpack.c.bf16 %v303_v60, %v302_v59  ;;  %v287_v63 = vld [vmem:[#allocation5 + $0xd8] sm:$0xff]  ;;  %v270_v2 = vld [vmem:[#allocation5 + $0x50] sm:$0xff]  ;;  %v304_v5 = vld [vmem:[#allocation5 + $0x160] sm:$0xff] }
  0x36   :  { %v599_v1 = vpack.c.bf16 %v287_v63, %v286_v62  ;;  %v271_v3 = vld [vmem:[#allocation5 + $0x58] sm:$0xff]  ;;  %v305_v6 = vld [vmem:[#allocation5 + $0x168] sm:$0xff]  ;;  %v288_v7 = vld [vmem:[#allocation5 + $0xe0] sm:$0xff] }
  0x37   :  { %v601_v4 = vpack.c.bf16 %v271_v3, %v270_v2  ;;  %v630_v8 = vpack.c.bf16 %v305_v6, %v304_v5  ;;  %v289_v9 = vld [vmem:[#allocation5 + $0xe8] sm:$0xff]  ;;  %v272_v10 = vld [vmem:[#allocation5 + $0x60] sm:$0xff]  ;;  %v306_v14 = vld [vmem:[#allocation5 + $0x170] sm:$0xff] }
  0x38   :  { %619 = vmatpush3.bf16.msra.mxu1 %v618_v34  ;;  %590 = vmatpush3.bf16.msra.mxu0 %v589_v40  ;;  %v273_v11 = vld [vmem:[#allocation5 + $0x68] sm:$0xff]  ;;  %v603_v12 = vpack.c.bf16 %v289_v9, %v288_v7  ;;  %v307_v15 = vld [vmem:[#allocation5 + $0x178] sm:$0xff]  ;;  %v290_v16 = vld [vmem:[#allocation5 + $0xf0] sm:$0xff] }
  0x39   :  { %620 = vmatprep.subr.bf16.mxu1 %v729_v0  ;;  %592 = vmatprep.subr.bf16.mxu0 %v591_v46  ;;  %v605_v13 = vpack.c.bf16 %v273_v11, %v272_v10  ;;  %v633_v17 = vpack.c.bf16 %v307_v15, %v306_v14  ;;  %v291_v18 = vld [vmem:[#allocation5 + $0xf8] sm:$0xff]  ;;  %v274_v19 = vld [vmem:[#allocation5 + $0x70] sm:$0xff] }
  0x3a   :  { %v275_v20 = vld [vmem:[#allocation5 + $0x78] sm:$0xff]  ;;  %v607_v21 = vpack.c.bf16 %v291_v18, %v290_v16  ;;  %v208_v27 = vld [vmem:[%s832_s2] sm:$0x7] }
  0x3b   :  { %v609_v22 = vpack.c.bf16 %v275_v20, %v274_v19  ;;  %v213_v29 = vrot.slane %v208_v27, %v212_v25  ;;  %v221_v30 = vrot.slane %v208_v27, %v220_v26  ;;  %v217_v32 = vrot.slane %v208_v27, %v216_v28 }
  0x3c   :  { %622 = vmatpush3.bf16.msra.mxu1 %v621_v43  ;;  %594 = vmatpush3.bf16.msra.mxu0 %v593_v49 }
  0x3d   :  { %623 = vmatprep.subr.bf16.mxu1 %v729_v0  ;;  %596 = vmatprep.subr.bf16.mxu0 %v595_v55 }
  0x40   :  { %625 = vmatpush3.bf16.msra.mxu1 %v624_v52  ;;  %598 = vmatpush3.bf16.msra.mxu0 %v597_v58 }
  0x41   :  { %626 = vmatprep.subr.bf16.mxu1 %v729_v0  ;;  %600 = vmatprep.subr.bf16.mxu0 %v599_v1 }
  0x44   :  { %628 = vmatpush3.bf16.msra.mxu1 %v627_v61  ;;  %602 = vmatpush3.bf16.msra.mxu0 %v601_v4  ;;  %v474_v61 = vld [vmem:[%s835_s5] ss:$0 sm:$0xff] }
  0x45   :  { %629 = vmatprep.subr.bf16.mxu1 %v729_v0  ;;  %604 = vmatprep.subr.bf16.mxu0 %v603_v12 }
  0x48   :  { %631 = vmatpush3.bf16.msra.mxu1 %v630_v8  ;;  %606 = vmatpush3.bf16.msra.mxu0 %v605_v13 }
  0x49   :  { %632 = vmatprep.subr.bf16.mxu1 %v729_v0  ;;  %608 = vmatprep.subr.bf16.mxu0 %v607_v21  ;;  %v231_v0 = vld [vmem:[%s833_s3] sm:$0x7] }
  0x4a   :  { %v236_v36 = vrot.slane %v231_v0, %v212_v25  ;;  %v244_v37 = vrot.slane %v231_v0, %v220_v26  ;;  %v240_v40 = vrot.slane %v231_v0, %v216_v28 }
  0x4c   :  { %634 = vmatpush3.bf16.msra.mxu1 %v633_v17  ;;  %610 = vmatpush3.bf16.msra.mxu0 %v609_v22 }
  0xbb   :  { %v57_v31 = vpop.xlane.xlu0 %56 }
  0xbc   :  { %v225_v33 = vmul.f32 %v213_v29, %v57_v31  ;;  %v227_v34 = vmul.f32 %v221_v30, %v57_v31  ;;  %v226_v35 = vmul.f32 %v217_v32, %v57_v31 }
 0x102   :  { %v133_v38 = vpop.f32.mrb[0].mxu0  ;;  %v204_v39 = vpop.f32.mrb[0].mxu1 }
 0x103   :  { %v228_v41 = vsub.f32 %v133_v38, %v225_v33  ;;  %v230_v42 = vsub.f32 %v204_v39, %v227_v34  ;;  %v135_v43 = vpop.f32.mrb[1].mxu0  ;;  %v536_v44 = vpop.f32.mrb[1].mxu1 }
 0x104   :  { %v229_v45 = vsub.f32 %v135_v43, %v226_v35 }
 0x105   :  { %v248_v46 = vsub.f32 %v228_v41, %v236_v36  ;;  %v250_v47 = vsub.f32 %v230_v42, %v244_v37 }
 0x106   :  { %v249_v48 = vsub.f32 %v229_v45, %v240_v40 }
 0x107   :  { %v251_v49 = vmin.f32 %v248_v46, 0.0  ;;  %v253_v50 = vmin.f32 %v250_v47, 0.0 }
 0x108   :  { %v252_v51 = vmin.f32 %v249_v48, 0.0 }
 0x109   :  { %v258_v52 = vmul.f32 1.442695, %v253_v50  ;;  %v254_v53 = vmul.f32 1.442695, %v251_v49 }
 0x10a   :  { %v256_v54 = vmul.f32 1.442695, %v252_v51 }
 0x10b   :  { %645 = vpow2.f32 %v258_v52 }
 0x10c   :  { %647 = vpow2.f32 %v256_v54 }
 0x10d   :  { %649 = vpow2.f32 %v254_v53 }
 0x115   :  { %v646_v55 = vpop.eup %645 }
 0x116   :  { %v648_v56 = vpop.eup %647  ;;  %570 = vmatmul.mubr.f32.vlgmr.msra.gmra.mrb[2].mxu1 %v646_v55 }
 0x117   :  { %v650_v57 = vpop.eup %649  ;;  %379 = vmatprep.mubr.f32.mxu0 %v648_v56 }
 0x118   :  { %380 = vmatmul.mubr.f32.vlgmr.msra.gmra.mrb[2].mxu0 %v650_v57 }
 0x1e9   :  { %v451_v58 = vpop.f32.mrb[2].mxu1 }
 0x1ea   :  { %v571_v59 = vpop.f32.mrb[3].mxu1 }
 0x1eb   :  { %v510_v60 = vpop.f32.mrb[2].mxu0 }
 0x1ec   :  { %v511_v62 = vpop.f32.mrb[3].mxu0 }
 0x1ed   :  { %v512_v63 = vadd.f32 %v511_v62, %v510_v60 }
 0x1ef   :  { %v382_v1 = vadd.f32 %v512_v63, %v474_v61 }
 0x1f1   :  { %v452_v2 = vadd.f32 %v451_v58, %v382_v1 }
 0x1f3   :  { %455 = vst [vmem:[#allocation7] sm:$0xff] %v452_v2 }
 0x1f4   :  { %706 = shalt.err (!%p703_p6)
}
 0x1f5   :  { %s707_s9 = scalar_lea.hbm %s836_s6, 128 }
 0x1f6   :  { %p708_p7 = scmp.ne.s32.totalorder %s836_s6, %s707_s9  ;;  %p711_p8 = scmp.lt.u32.totalorder %s707_s9, %s836_s6 }
 0x1f8   :  { %p713_p9 = pnand %p711_p8, %p708_p7 }
 0x1fa   :  { %716 = shalt.err (!%p713_p9)
}
 0x1fb   :  { %465 = dma.vmem_to_hbm [thread:$0]  %s463_s29, 128, %s836_s6, [#allocation4]  }
 0x1fc   :  { %721 = dma.done.wait [#allocation4], 128  }
 0x1fd   :  { %722 = vsyncadd [#allocation4], 4294967168 }
 0x1fe   :  { %469 = vsyncpa [#allocation3], 1 }
 0x1ff   :  { %470 = vsyncpa [#allocation6], 1 }
 0x200   :  { %471 = vsyncpa [#allocation4], 1 }

</bundles_post_ra>
